<compile_context>
chip_gen: v7x
topology: tpu7x:2x2x1
jax: 0.10.0
libtpu: 0.0.40
codegen_flags: <defaults>
</compile_context>

<pallas_src>
import jax
import jax.numpy as jnp
import numpy as np
from jax.experimental import pallas as pl
from jax.experimental.pallas import tpu as pltpu

# ---- model dims (small, consistent with the module's constructor args) ------
VOCAB = 128        # output_size
EMB = 32           # embedding_size
HID = 32           # hidden_size
N_LAYERS = 3
GATES = 4 * HID
LANES = max(GATES, VOCAB)   # lane width of the packed weight slab (=128 here)


# ---------------------- packed weight-slab layout (static) -------------------
def _slab_layout():
    offs = {}
    r = 0
    for l in range(N_LAYERS):
        in_dim = EMB if l == 0 else HID
        offs[("wih", l)] = (r, in_dim); r += in_dim
        offs[("whh", l)] = (r, HID);    r += HID
    offs[("wout", 0)] = (r, HID); r += HID
    r = -(-r // 8) * 8                       # align bias rows to a sublane tile
    for l in range(N_LAYERS):
        offs[("b", l)] = (r, 1); r += 1
    offs[("bout", 0)] = (r, 1); r += 1
    rows = -(-r // 8) * 8
    return offs, rows


SLAB_OFFS, SLAB_ROWS = _slab_layout()        # 232 rows x 128 lanes (f32) ~ 116 KiB


# ------------------------------- Pallas kernel -------------------------------
def lstm_decoder_kernel(
    toks_ref,        # SMEM (T,) int32
    emb_ref,         # VMEM (VOCAB, EMB)
    w_ref,           # VMEM (SLAB_ROWS, LANES)  packed weights/biases
    state_ref,       # VMEM (2*N_LAYERS, HID)   rows [0,3)=h, [3,6)=c
    logp_ref,        # VMEM (T, VOCAB)          out
    state_out_ref,   # VMEM (2*N_LAYERS, HID)   out (aliased with state_ref's buffer)
):
    H = HID
    T = logp_ref.shape[0]

    def wslice(name, l):
        r0, nrows = SLAB_OFFS[(name, l)]
        return w_ref[r0:r0 + nrows, :]

    # Working h/c state lives in the (input-aliased) output buffer.
    state_out_ref[...] = state_ref[...]

    @pl.loop(0, T)
    def _step(t):
        tok = jnp.clip(toks_ref[t], 0, VOCAB - 1)           # guard unchecked VMEM gather
        x = jnp.maximum(emb_ref[pl.ds(tok, 1), :], 0.0)     # embedding row + ReLU, (1, EMB)

        # Recurrent contributions r_l = h_l @ Whh_l + b_l depend only on last
        # step's state: issue all three MXU matmuls up front (off the serial chain).
        rec = []
        for l in range(N_LAYERS):
            h_prev = state_out_ref[l:l + 1, :]                                   # (1, H)
            rec.append(
                jnp.dot(h_prev, wslice("whh", l)[:, :GATES],
                        preferred_element_type=jnp.float32)
                + wslice("b", l)[:, :GATES])

        # Serial layer chain: x @ Wih_l + rec_l + activations.
        for l in range(N_LAYERS):
            gates = jnp.dot(x, wslice("wih", l)[:, :GATES],
                            preferred_element_type=jnp.float32) + rec[l]         # (1, 4H)
            sig = jax.nn.sigmoid(gates)     # one EUP pass over the full gates vreg
            tnh = jnp.tanh(gates)           # one EUP pass over the full gates vreg
            i_g = sig[:, 0 * H:1 * H]
            f_g = sig[:, 1 * H:2 * H]
            o_g = sig[:, 3 * H:4 * H]
            g_g = tnh[:, 2 * H:3 * H]
            c_prev = state_out_ref[N_LAYERS + l:N_LAYERS + l + 1, :]
            c_new = f_g * c_prev + i_g * g_g
            h_new = o_g * jnp.tanh(c_new)
            state_out_ref[l:l + 1, :] = h_new
            state_out_ref[N_LAYERS + l:N_LAYERS + l + 1, :] = c_new
            x = h_new
            # TODO(synk): nn.LSTM inter-layer dropout (p=0.1) is training-only; eval semantics here.

        # output projection + log_softmax over vocab (dim=1)
        logits = (jnp.dot(x, wslice("wout", 0)[:, :VOCAB],
                          preferred_element_type=jnp.float32)
                  + wslice("bout", 0)[:, :VOCAB])                                # (1, VOCAB)
        m = jnp.max(logits, axis=1, keepdims=True)
        lse = m + jnp.log(jnp.sum(jnp.exp(logits - m), axis=1, keepdims=True))
        logp_ref[pl.ds(t, 1), :] = logits - lse


# --------------------------------- wrapper -----------------------------------
def lstm_decoder_forward(tokens, state, params):
    """tokens: (T,) int32; state: (2*N_LAYERS, HID) f32 (h rows then c rows).

    Returns (logp: (T, VOCAB), new_state: (2*N_LAYERS, HID)).  T == 1 reproduces
    the module's single-step forward exactly; T > 1 fuses teacher-forced steps
    into one launch.  `state` is donated (aliased in place)."""
    T = tokens.shape[0]
    vmem = pl.BlockSpec(memory_space=pltpu.MemorySpace.VMEM)
    smem = pl.BlockSpec(memory_space=pltpu.MemorySpace.SMEM)
    return pl.pallas_call(
        lstm_decoder_kernel,
        out_shape=(jax.ShapeDtypeStruct((T, VOCAB), jnp.float32),
                   jax.ShapeDtypeStruct((2 * N_LAYERS, HID), jnp.float32)),
        in_specs=[smem, vmem, vmem, vmem],
        out_specs=(vmem, vmem),
        input_output_aliases={3: 1},      # h/c state updated in place
    )(tokens, params["emb"], params["wslab"], state)


# ------------------------- deterministic parameter init ----------------------
def init_params(key):
    ks = jax.random.split(key, 3 + 4 * N_LAYERS)
    s = 1.0 / np.sqrt(HID)
    raw = {"wih": [], "whh": [], "b": []}
    emb = jax.random.normal(ks[0], (VOCAB, EMB), jnp.float32) * 0.1
    slab = jnp.zeros((SLAB_ROWS, LANES), jnp.float32)
    for l in range(N_LAYERS):
        in_dim = EMB if l == 0 else HID
        # stored pre-transposed: (in, 4H) so kernel does x @ W
        wih = jax.random.uniform(ks[1 + 4 * l], (in_dim, GATES), jnp.float32, -s, s)
        whh = jax.random.uniform(ks[2 + 4 * l], (HID, GATES), jnp.float32, -s, s)
        b_ih = jax.random.uniform(ks[3 + 4 * l], (GATES,), jnp.float32, -s, s)
        b_hh = jax.random.uniform(ks[4 + 4 * l], (GATES,), jnp.float32, -s, s)
        b = b_ih + b_hh                       # biases only ever appear summed
        raw["wih"].append(wih); raw["whh"].append(whh); raw["b"].append(b[None, :])
        r0, _ = SLAB_OFFS[("wih", l)]; slab = slab.at[r0:r0 + in_dim, :GATES].set(wih)
        r0, _ = SLAB_OFFS[("whh", l)]; slab = slab.at[r0:r0 + HID, :GATES].set(whh)
        r0, _ = SLAB_OFFS[("b", l)];   slab = slab.at[r0, :GATES].set(b)
    wout = jax.random.uniform(ks[-2], (HID, VOCAB), jnp.float32, -s, s)
    bout = jax.random.uniform(ks[-1], (VOCAB,), jnp.float32, -s, s)
    r0, _ = SLAB_OFFS[("wout", 0)]; slab = slab.at[r0:r0 + HID, :VOCAB].set(wout)
    r0, _ = SLAB_OFFS[("bout", 0)]; slab = slab.at[r0, :VOCAB].set(bout)
    raw["wout"] = wout
    raw["bout"] = bout[None, :]
    return {"emb": emb, "wslab": slab, "_raw": raw}


# -------------------------------- pure-JAX ref --------------------------------
def reference_forward(tokens, h0, c0, params):
    raw = params["_raw"]
    h, c = h0, c0
    logps = []
    for t in range(tokens.shape[0]):
        x = jnp.maximum(params["emb"][tokens[t]][None, :], 0.0)
        h_new, c_new = [], []
        for l in range(N_LAYERS):
            gates = x @ raw["wih"][l] + h[l] @ raw["whh"][l] + raw["b"][l]
            i_g = jax.nn.sigmoid(gates[:, 0 * HID:1 * HID])
            f_g = jax.nn.sigmoid(gates[:, 1 * HID:2 * HID])
            g_g = jnp.tanh(gates[:, 2 * HID:3 * HID])
            o_g = jax.nn.sigmoid(gates[:, 3 * HID:4 * HID])
            cc = f_g * c[l] + i_g * g_g
            hh = o_g * jnp.tanh(cc)
            h_new.append(hh); c_new.append(cc)
            x = hh
        logits = x @ raw["wout"] + raw["bout"]
        logps.append(jax.nn.log_softmax(logits, axis=1)[0])
        h, c = jnp.stack(h_new), jnp.stack(c_new)
    return jnp.stack(logps), h, c


# ----------------------------------- main -------------------------------------
if __name__ == "__main__":
    key = jax.random.PRNGKey(0)
    k_p, k_t, k_h, k_c = jax.random.split(key, 4)

    T = 8
    params = init_params(k_p)
    tokens = jax.random.randint(k_t, (T,), 0, VOCAB, dtype=jnp.int32)
    h0 = jax.random.normal(k_h, (N_LAYERS, 1, HID), jnp.float32)
    c0 = jax.random.normal(k_c, (N_LAYERS, 1, HID), jnp.float32)

    # Compute the reference first (the packed state passed to the kernel is donated).
    ref_logp, ref_h, ref_c = reference_forward(tokens, h0, c0, params)

    state0 = jnp.concatenate([h0[:, 0, :], c0[:, 0, :]], axis=0)   # (2*N_LAYERS, HID)
    logp, state1 = lstm_decoder_forward(tokens, state0, params)
    jax.block_until_ready((logp, state1))

    h1 = state1[:N_LAYERS].reshape(N_LAYERS, 1, HID)
    c1 = state1[N_LAYERS:].reshape(N_LAYERS, 1, HID)

    np.testing.assert_allclose(np.asarray(logp), np.asarray(ref_logp), atol=2e-4, rtol=2e-4)
    np.testing.assert_allclose(np.asarray(h1), np.asarray(ref_h), atol=2e-4, rtol=2e-4)
    np.testing.assert_allclose(np.asarray(c1), np.asarray(ref_c), atol=2e-4, rtol=2e-4)

    print("KERNEL_OK")
</pallas_src>

<mosaic_0001>
module attributes {stable_mosaic.version = 11 : i64} {
  func.func @lstm_decoder_kernel(%arg0: memref<8xi32, #tpu.memory_space<smem>>, %arg1: memref<128x32xf32, #tpu.memory_space<vmem>>, %arg2: memref<232x128xf32, #tpu.memory_space<vmem>>, %arg3: memref<6x32xf32, #tpu.memory_space<vmem>>, %arg4: memref<8x128xf32, #tpu.memory_space<vmem>>, %arg5: memref<6x32xf32, #tpu.memory_space<vmem>>) attributes {dimension_semantics = [], scalar_prefetch = 0 : i64, scratch_operands = 0 : i64, tpu.core_type = #tpu.core_type<tc>} {
    %c0 = arith.constant 0 : index
    %c0_0 = arith.constant 0 : index
    %0 = vector.load %arg3[%c0, %c0_0] : memref<6x32xf32, #tpu.memory_space<vmem>>, vector<6x32xf32>
    %c0_1 = arith.constant 0 : index
    %c0_2 = arith.constant 0 : index
    %1 = vector.load %arg5[%c0_1, %c0_2] : memref<6x32xf32, #tpu.memory_space<vmem>>, vector<6x32xf32>
    tpu.vector_store %arg5[%c0_1, %c0_2], %0 {strides = array<i32>} : memref<6x32xf32, #tpu.memory_space<vmem>>, vector<6x32xf32>,
    %c0_i32 = arith.constant 0 : i32
    %c8_i32 = arith.constant 8 : i32
    %2 = arith.addi %c0_i32, %c8_i32 : i32
    %c1_i32 = arith.constant 1 : i32
    scf.for %arg6 = %c0_i32 to %2 step %c1_i32  : i32 {
      %c1_i32_4 = arith.constant 1 : i32
      %3 = arith.muli %arg6, %c1_i32_4 : i32
      %c0_i32_5 = arith.constant 0 : i32
      %4 = arith.addi %c0_i32_5, %3 : i32
      %5 = arith.index_cast %4 : i32 to index
      %6 = memref.load %arg0[%5] : memref<8xi32, #tpu.memory_space<smem>>
      %c0_i32_6 = arith.constant 0 : i32
      %c127_i32 = arith.constant 127 : i32
      %7 = arith.maxsi %c0_i32_6, %6 : i32
      %8 = arith.minsi %c127_i32, %7 : i32
      %9 = arith.index_cast %8 : i32 to index
      %c0_7 = arith.constant 0 : index
      %10 = vector.load %arg1[%9, %c0_7] : memref<128x32xf32, #tpu.memory_space<vmem>>, vector<1x32xf32>
      %cst = arith.constant 0.000000e+00 : f32
      %11 = vector.broadcast %cst : f32 to vector<1x32xf32>
      %12 = arith.maximumf %10, %11 : vector<1x32xf32>
      %c0_8 = arith.constant 0 : index
      %c0_9 = arith.constant 0 : index
      %13 = vector.load %arg5[%c0_8, %c0_9] : memref<6x32xf32, #tpu.memory_space<vmem>>, vector<1x32xf32>
      %c32 = arith.constant 32 : index
      %c0_10 = arith.constant 0 : index
      %14 = vector.load %arg2[%c32, %c0_10] : memref<232x128xf32, #tpu.memory_space<vmem>>, vector<32x128xf32>
      %cst_11 = arith.constant dense<0.000000e+00> : vector<1x128xf32>
      %15 = tpu.matmul %13, %14, %cst_11 {dimension_numbers = #tpu.dot_dimension_numbers<[1], [0], [0], [1], [0, 0, 1, 1], [], []>} : vector<1x32xf32>, vector<32x128xf32>, vector<1x128xf32> -> vector<1x128xf32>
      %c224 = arith.constant 224 : index
      %c0_12 = arith.constant 0 : index
      %16 = vector.load %arg2[%c224, %c0_12] : memref<232x128xf32, #tpu.memory_space<vmem>>, vector<1x128xf32>
      %17 = arith.addf %15, %16 : vector<1x128xf32>
      %c1 = arith.constant 1 : index
      %c0_13 = arith.constant 0 : index
      %18 = vector.load %arg5[%c1, %c0_13] : memref<6x32xf32, #tpu.memory_space<vmem>>, vector<1x32xf32>
      %c96 = arith.constant 96 : index
      %c0_14 = arith.constant 0 : index
      %19 = vector.load %arg2[%c96, %c0_14] : memref<232x128xf32, #tpu.memory_space<vmem>>, vector<32x128xf32>
      %cst_15 = arith.constant dense<0.000000e+00> : vector<1x128xf32>
      %20 = tpu.matmul %18, %19, %cst_15 {dimension_numbers = #tpu.dot_dimension_numbers<[1], [0], [0], [1], [0, 0, 1, 1], [], []>} : vector<1x32xf32>, vector<32x128xf32>, vector<1x128xf32> -> vector<1x128xf32>
      %c225 = arith.constant 225 : index
      %c0_16 = arith.constant 0 : index
      %21 = vector.load %arg2[%c225, %c0_16] : memref<232x128xf32, #tpu.memory_space<vmem>>, vector<1x128xf32>
      %22 = arith.addf %20, %21 : vector<1x128xf32>
      %c2 = arith.constant 2 : index
      %c0_17 = arith.constant 0 : index
      %23 = vector.load %arg5[%c2, %c0_17] : memref<6x32xf32, #tpu.memory_space<vmem>>, vector<1x32xf32>
      %c160 = arith.constant 160 : index
      %c0_18 = arith.constant 0 : index
      %24 = vector.load %arg2[%c160, %c0_18] : memref<232x128xf32, #tpu.memory_space<vmem>>, vector<32x128xf32>
      %cst_19 = arith.constant dense<0.000000e+00> : vector<1x128xf32>
      %25 = tpu.matmul %23, %24, %cst_19 {dimension_numbers = #tpu.dot_dimension_numbers<[1], [0], [0], [1], [0, 0, 1, 1], [], []>} : vector<1x32xf32>, vector<32x128xf32>, vector<1x128xf32> -> vector<1x128xf32>
      %c226 = arith.constant 226 : index
      %c0_20 = arith.constant 0 : index
      %26 = vector.load %arg2[%c226, %c0_20] : memref<232x128xf32, #tpu.memory_space<vmem>>, vector<1x128xf32>
      %27 = arith.addf %25, %26 : vector<1x128xf32>
      %c0_21 = arith.constant 0 : index
      %c0_22 = arith.constant 0 : index
      %28 = vector.load %arg2[%c0_21, %c0_22] : memref<232x128xf32, #tpu.memory_space<vmem>>, vector<32x128xf32>
      %cst_23 = arith.constant dense<0.000000e+00> : vector<1x128xf32>
      %29 = tpu.matmul %12, %28, %cst_23 {dimension_numbers = #tpu.dot_dimension_numbers<[1], [0], [0], [1], [0, 0, 1, 1], [], []>} : vector<1x32xf32>, vector<32x128xf32>, vector<1x128xf32> -> vector<1x128xf32>
      %30 = arith.addf %29, %17 : vector<1x128xf32>
      %31 = arith.negf %30 : vector<1x128xf32>
      %32 = math.exp %31 : vector<1x128xf32>
      %cst_24 = arith.constant 1.000000e+00 : f32
      %33 = vector.broadcast %cst_24 : f32 to vector<1x128xf32>
      %34 = arith.addf %33, %32 : vector<1x128xf32>
      %35 = arith.divf %33, %34 : vector<1x128xf32>
      %36 = math.tanh %30 : vector<1x128xf32>
      %37 = vector.extract_strided_slice %35 {offsets = [0, 0], sizes = [1, 32], strides = [1, 1]} : vector<1x128xf32> to vector<1x32xf32>
      %38 = vector.extract_strided_slice %35 {offsets = [0, 32], sizes = [1, 32], strides = [1, 1]} : vector<1x128xf32> to vector<1x32xf32>
      %39 = vector.extract_strided_slice %35 {offsets = [0, 96], sizes = [1, 32], strides = [1, 1]} : vector<1x128xf32> to vector<1x32xf32>
      %40 = vector.extract_strided_slice %36 {offsets = [0, 64], sizes = [1, 32], strides = [1, 1]} : vector<1x128xf32> to vector<1x32xf32>
      %c3 = arith.constant 3 : index
      %c0_25 = arith.constant 0 : index
      %41 = vector.load %arg5[%c3, %c0_25] : memref<6x32xf32, #tpu.memory_space<vmem>>, vector<1x32xf32>
      %42 = arith.mulf %38, %41 : vector<1x32xf32>
      %43 = arith.mulf %37, %40 : vector<1x32xf32>
      %44 = arith.addf %42, %43 : vector<1x32xf32>
      %45 = math.tanh %44 : vector<1x32xf32>
      %46 = arith.mulf %39, %45 : vector<1x32xf32>
      %c0_26 = arith.constant 0 : index
      %c0_27 = arith.constant 0 : index
      %47 = vector.load %arg5[%c0_26, %c0_27] : memref<6x32xf32, #tpu.memory_space<vmem>>, vector<1x32xf32>
      tpu.vector_store %arg5[%c0_26, %c0_27], %46 {strides = array<i32>} : memref<6x32xf32, #tpu.memory_space<vmem>>, vector<1x32xf32>,
      %c3_28 = arith.constant 3 : index
      %c0_29 = arith.constant 0 : index
      %48 = vector.load %arg5[%c3_28, %c0_29] : memref<6x32xf32, #tpu.memory_space<vmem>>, vector<1x32xf32>
      tpu.vector_store %arg5[%c3_28, %c0_29], %44 {strides = array<i32>} : memref<6x32xf32, #tpu.memory_space<vmem>>, vector<1x32xf32>,
      %c64 = arith.constant 64 : index
      %c0_30 = arith.constant 0 : index
      %49 = vector.load %arg2[%c64, %c0_30] : memref<232x128xf32, #tpu.memory_space<vmem>>, vector<32x128xf32>
      %cst_31 = arith.constant dense<0.000000e+00> : vector<1x128xf32>
      %50 = tpu.matmul %46, %49, %cst_31 {dimension_numbers = #tpu.dot_dimension_numbers<[1], [0], [0], [1], [0, 0, 1, 1], [], []>} : vector<1x32xf32>, vector<32x128xf32>, vector<1x128xf32> -> vector<1x128xf32>
      %51 = arith.addf %50, %22 : vector<1x128xf32>
      %52 = arith.negf %51 : vector<1x128xf32>
      %53 = math.exp %52 : vector<1x128xf32>
      %cst_32 = arith.constant 1.000000e+00 : f32
      %54 = vector.broadcast %cst_32 : f32 to vector<1x128xf32>
      %55 = arith.addf %54, %53 : vector<1x128xf32>
      %56 = arith.divf %54, %55 : vector<1x128xf32>
      %57 = math.tanh %51 : vector<1x128xf32>
      %58 = vector.extract_strided_slice %56 {offsets = [0, 0], sizes = [1, 32], strides = [1, 1]} : vector<1x128xf32> to vector<1x32xf32>
      %59 = vector.extract_strided_slice %56 {offsets = [0, 32], sizes = [1, 32], strides = [1, 1]} : vector<1x128xf32> to vector<1x32xf32>
      %60 = vector.extract_strided_slice %56 {offsets = [0, 96], sizes = [1, 32], strides = [1, 1]} : vector<1x128xf32> to vector<1x32xf32>
      %61 = vector.extract_strided_slice %57 {offsets = [0, 64], sizes = [1, 32], strides = [1, 1]} : vector<1x128xf32> to vector<1x32xf32>
      %c4 = arith.constant 4 : index
      %c0_33 = arith.constant 0 : index
      %62 = vector.load %arg5[%c4, %c0_33] : memref<6x32xf32, #tpu.memory_space<vmem>>, vector<1x32xf32>
      %63 = arith.mulf %59, %62 : vector<1x32xf32>
      %64 = arith.mulf %58, %61 : vector<1x32xf32>
      %65 = arith.addf %63, %64 : vector<1x32xf32>
      %66 = math.tanh %65 : vector<1x32xf32>
      %67 = arith.mulf %60, %66 : vector<1x32xf32>
      %c1_34 = arith.constant 1 : index
      %c0_35 = arith.constant 0 : index
      %68 = vector.load %arg5[%c1_34, %c0_35] : memref<6x32xf32, #tpu.memory_space<vmem>>, vector<1x32xf32>
      tpu.vector_store %arg5[%c1_34, %c0_35], %67 {strides = array<i32>} : memref<6x32xf32, #tpu.memory_space<vmem>>, vector<1x32xf32>,
      %c4_36 = arith.constant 4 : index
      %c0_37 = arith.constant 0 : index
      %69 = vector.load %arg5[%c4_36, %c0_37] : memref<6x32xf32, #tpu.memory_space<vmem>>, vector<1x32xf32>
      tpu.vector_store %arg5[%c4_36, %c0_37], %65 {strides = array<i32>} : memref<6x32xf32, #tpu.memory_space<vmem>>, vector<1x32xf32>,
      %c128 = arith.constant 128 : index
      %c0_38 = arith.constant 0 : index
      %70 = vector.load %arg2[%c128, %c0_38] : memref<232x128xf32, #tpu.memory_space<vmem>>, vector<32x128xf32>
      %cst_39 = arith.constant dense<0.000000e+00> : vector<1x128xf32>
      %71 = tpu.matmul %67, %70, %cst_39 {dimension_numbers = #tpu.dot_dimension_numbers<[1], [0], [0], [1], [0, 0, 1, 1], [], []>} : vector<1x32xf32>, vector<32x128xf32>, vector<1x128xf32> -> vector<1x128xf32>
      %72 = arith.addf %71, %27 : vector<1x128xf32>
      %73 = arith.negf %72 : vector<1x128xf32>
      %74 = math.exp %73 : vector<1x128xf32>
      %cst_40 = arith.constant 1.000000e+00 : f32
      %75 = vector.broadcast %cst_40 : f32 to vector<1x128xf32>
      %76 = arith.addf %75, %74 : vector<1x128xf32>
      %77 = arith.divf %75, %76 : vector<1x128xf32>
      %78 = math.tanh %72 : vector<1x128xf32>
      %79 = vector.extract_strided_slice %77 {offsets = [0, 0], sizes = [1, 32], strides = [1, 1]} : vector<1x128xf32> to vector<1x32xf32>
      %80 = vector.extract_strided_slice %77 {offsets = [0, 32], sizes = [1, 32], strides = [1, 1]} : vector<1x128xf32> to vector<1x32xf32>
      %81 = vector.extract_strided_slice %77 {offsets = [0, 96], sizes = [1, 32], strides = [1, 1]} : vector<1x128xf32> to vector<1x32xf32>
      %82 = vector.extract_strided_slice %78 {offsets = [0, 64], sizes = [1, 32], strides = [1, 1]} : vector<1x128xf32> to vector<1x32xf32>
      %c5 = arith.constant 5 : index
      %c0_41 = arith.constant 0 : index
      %83 = vector.load %arg5[%c5, %c0_41] : memref<6x32xf32, #tpu.memory_space<vmem>>, vector<1x32xf32>
      %84 = arith.mulf %80, %83 : vector<1x32xf32>
      %85 = arith.mulf %79, %82 : vector<1x32xf32>
      %86 = arith.addf %84, %85 : vector<1x32xf32>
      %87 = math.tanh %86 : vector<1x32xf32>
      %88 = arith.mulf %81, %87 : vector<1x32xf32>
      %c2_42 = arith.constant 2 : index
      %c0_43 = arith.constant 0 : index
      %89 = vector.load %arg5[%c2_42, %c0_43] : memref<6x32xf32, #tpu.memory_space<vmem>>, vector<1x32xf32>
      tpu.vector_store %arg5[%c2_42, %c0_43], %88 {strides = array<i32>} : memref<6x32xf32, #tpu.memory_space<vmem>>, vector<1x32xf32>,
      %c5_44 = arith.constant 5 : index
      %c0_45 = arith.constant 0 : index
      %90 = vector.load %arg5[%c5_44, %c0_45] : memref<6x32xf32, #tpu.memory_space<vmem>>, vector<1x32xf32>
      tpu.vector_store %arg5[%c5_44, %c0_45], %86 {strides = array<i32>} : memref<6x32xf32, #tpu.memory_space<vmem>>, vector<1x32xf32>,
      %c192 = arith.constant 192 : index
      %c0_46 = arith.constant 0 : index
      %91 = vector.load %arg2[%c192, %c0_46] : memref<232x128xf32, #tpu.memory_space<vmem>>, vector<32x128xf32>
      %cst_47 = arith.constant dense<0.000000e+00> : vector<1x128xf32>
      %92 = tpu.matmul %88, %91, %cst_47 {dimension_numbers = #tpu.dot_dimension_numbers<[1], [0], [0], [1], [0, 0, 1, 1], [], []>} : vector<1x32xf32>, vector<32x128xf32>, vector<1x128xf32> -> vector<1x128xf32>
      %c227 = arith.constant 227 : index
      %c0_48 = arith.constant 0 : index
      %93 = vector.load %arg2[%c227, %c0_48] : memref<232x128xf32, #tpu.memory_space<vmem>>, vector<1x128xf32>
      %94 = arith.addf %92, %93 : vector<1x128xf32>
      %cst_49 = arith.constant dense<0xFF800000> : vector<1xf32>
      %95 = vector.multi_reduction <maximumf>, %94, %cst_49 [1] : vector<1x128xf32> to vector<1xf32>
      %96 = vector.shape_cast %95 : vector<1xf32> to vector<1x1xf32>
      %97 = vector.broadcast %96 : vector<1x1xf32> to vector<1x128xf32>
      %98 = arith.subf %94, %97 : vector<1x128xf32>
      %99 = math.exp %98 : vector<1x128xf32>
      %cst_50 = arith.constant dense<0.000000e+00> : vector<1xf32>
      %100 = vector.multi_reduction <add>, %99, %cst_50 [1] : vector<1x128xf32> to vector<1xf32>
      %101 = vector.shape_cast %100 : vector<1xf32> to vector<1x1xf32>
      %102 = math.log %101 : vector<1x1xf32>
      %103 = arith.addf %96, %102 : vector<1x1xf32>
      %104 = vector.broadcast %103 : vector<1x1xf32> to vector<1x128xf32>
      %105 = arith.subf %94, %104 : vector<1x128xf32>
      %106 = arith.index_cast %4 : i32 to index
      %c0_51 = arith.constant 0 : index
      %107 = vector.load %arg4[%106, %c0_51] : memref<8x128xf32, #tpu.memory_space<vmem>>, vector<1x128xf32>
      tpu.vector_store %arg4[%106, %c0_51], %105 {strides = array<i32>} : memref<8x128xf32, #tpu.memory_space<vmem>>, vector<1x128xf32>,
    }
    %c8_i32_3 = arith.constant 8 : i32
    return
  }
}

</mosaic_0001>

<bundles_post_ra>
// kernel: tpu_custom_call.1
= control target key start
LH: loop header
LB: loop body
LE: loop exit
PB: predicated region body
PF: predicated region fallthrough
CT: control target
= control target key end

     0   :  { %11 = vsyncpa [#allocation5], 0  ;;  %s1313_s0 = inlined_call_operand.vmem [shape: s32[8], index: 0, kind: input, shape index: {}]   ;;  %s1314_s1 = inlined_call_operand.vmem [shape: f32[128,32], index: 1, kind: input, shape index: {}]   ;;  %s1315_s2 = inlined_call_operand.hbm [shape: f32[232,128], index: 2, kind: input, shape index: {}]   ;;  %s1316_s3 = inlined_call_operand.hbm [shape: f32[6,32], index: 3, kind: input, shape index: {}, may-alias: {3,5}]   ;;  %s1317_s4 = inlined_call_operand.hbm [shape: f32[8,128], index: 4, kind: output, shape index: {0}]   ;;  %s1318_s5 = inlined_call_operand.hbm [shape: f32[6,32], index: 5, kind: output, shape index: {1}, may-alias: {3,5}]  }
   0x1   :  { %12 = vsyncpa [#allocation3], 0 }
   0x2   :  { %13 = vsyncpa [#allocation8], 0 }
   0x3   :  { %14 = vsyncpa [#allocation4], 0 }
   0x4   :  { %15 = vsyncpa [#allocation11], 0  ;;  %s22_s20 = sshll.u32 %s1313_s0, 4  ;;  %s23_s20 = int_to_ptr.vmem [resolvable:$true] %s22_s20 }
   0x5   :  { %s1022_s21 = scalar_lea.vmem %s23_s20, 16  ;;  %p1027_p1 = scmp.lt.s32.totalorder %s23_s20, %s23_s20 }
   0x6   :  { %p1023_p0 = scmp.ne.s32.totalorder %s23_s20, %s1022_s21  ;;  %p1028_p2 = scmp.lt.s32.totalorder %s1022_s21, %s1022_s21 }
   0x8   :  { %p1029_p3 = por %p1028_p2, %p1027_p1 }
   0xa   :  { %p1030_p4 = pnand %p1029_p3, %p1023_p0 }
   0xc   :  { %1033 = shalt.err (!%p1030_p4)
}
   0xd   :  { %s1140_s22 = smov [#allocation2]   ;;  %s1141_s23 = smov [#allocation6]  }
   0xe   :  { %25 = dma.vmem_to_smem %s23_s20, 16, %s1140_s22, [#allocation5]  }
   0xf   :  { %s33_s24 = sshll.u32 %s1141_s23, 4  ;;  %s1034_s27 = scalar_lea.hbm %s1315_s2, 3712  ;;  %s34_s24 = int_to_ptr.vmem [resolvable:$true] %s33_s24 }
  0x10   :  { %p1035_p5 = scmp.ne.s32.totalorder %s1315_s2, %s1034_s27  ;;  %p1038_p6 = scmp.lt.u32.totalorder %s1034_s27, %s1315_s2 }
  0x12   :  { %p1040_p7 = pnand %p1038_p6, %p1035_p5 }
  0x14   :  { %1043 = shalt.err (!%p1040_p7)
}
  0x15   :  { %s1044_s6 = scalar_lea.vmem %s34_s24, 3712  ;;  %p1049_p9 = scmp.lt.s32.totalorder %s34_s24, %s34_s24 }
  0x16   :  { %p1045_p8 = scmp.ne.s32.totalorder %s34_s24, %s1044_s6  ;;  %p1050_p10 = scmp.lt.s32.totalorder %s1044_s6, %s1044_s6 }
  0x18   :  { %p1051_p11 = por %p1050_p10, %p1049_p9 }
  0x1a   :  { %p1052_p12 = pnand %p1051_p11, %p1045_p8 }
  0x1c   :  { %1055 = shalt.err (!%p1052_p12)
}
  0x1d   :  { %s1142_s7 = smov 128   ;;  %s1143_s8 = smov 8  }
  0x1e   :  { %39 = dma.hbm_to_vmem [thread:$0]  %s1315_s2, 3712, %s34_s24, [#allocation3], %s1142_s7, %s1142_s7, %s1143_s8  }
  0x1f   :  { %s1144_s11 = smov [#allocation7]   ;;  %s1056_s15 = scalar_lea.hbm %s1316_s3, 128 }
  0x20   :  { %s46_s12 = sshll.u32 %s1144_s11, 4  ;;  %p1057_p13 = scmp.ne.s32.totalorder %s1316_s3, %s1056_s15  ;;  %s47_s12 = int_to_ptr.vmem [resolvable:$true] %s46_s12 }
  0x21   :  { %p1060_p0 = scmp.lt.u32.totalorder %s1056_s15, %s1316_s3 }
  0x23   :  { %p1062_p1 = pnand %p1060_p0, %p1057_p13 }
  0x25   :  { %1065 = shalt.err (!%p1062_p1)
}
  0x26   :  { %s1066_s20 = scalar_lea.vmem %s47_s12, 128  ;;  %p1071_p3 = scmp.lt.s32.totalorder %s47_s12, %s47_s12 }
  0x27   :  { %p1067_p2 = scmp.ne.s32.totalorder %s47_s12, %s1066_s20  ;;  %p1072_p4 = scmp.lt.s32.totalorder %s1066_s20, %s1066_s20 }
  0x29   :  { %p1073_p5 = por %p1072_p4, %p1071_p3 }
  0x2b   :  { %p1074_p6 = pnand %p1073_p5, %p1067_p2 }
  0x2d   :  { %1077 = shalt.err (!%p1074_p6)
}
  0x2e   :  { %49 = dma.hbm_to_vmem [thread:$0]  %s1316_s3, 128, %s47_s12, [#allocation8]  }
  0x2f   :  { %1126 = dma.done.wait [#allocation5], 16  }
  0x30   :  { %1127 = vsyncadd [#allocation5], 4294967280 }
  0x31   :  { %1128 = dma.done.wait [#allocation3], 3712  }
  0x32   :  { %1129 = vsyncadd [#allocation3], 4294963584 }
  0x33   :  { %1130 = dma.done.wait [#allocation8], 128  }
  0x34   :  { %1131 = vsyncadd [#allocation8], 4294967168 }
  0x35   :  { %59 = sfence }
  0x36   :  { %v60_v0 = vld [vmem:[#allocation7] sm:$0x3f]  ;;  %vm61_vm0 = vcmask 259072   ;;  %s1210_s22 = smov 0  }
  0x37   :  { %62 = vst.msk [vmem:[#allocation10] sm:$0x3f] %vm61_vm0, %v60_v0 }
  0x38 LB: > { %v78_v1 = vld [vmem:[#allocation6 + $0x20] sm:$0xff]  ;;  %v79_v2 = vld [vmem:[#allocation6 + $0x28] sm:$0xff]  ;;  %v80_v3 = vld [vmem:[#allocation6 + $0x30] sm:$0xff]  ;;  %v1145_v4 = vmov 0.0|0.0   ;;  %vm1146_vm1 = vmmov 0   ;;  %v1147_v7 = vmov 0.0   ;;  %s1138_s22 = sphi %s1210_s22, %s68_s22  }
  0x39   : > { %922 = vmatprep.subr.bf16.mxu0 %v1145_v4  ;;  %v923_v5 = vpack.c.bf16 %v79_v2, %v78_v1  ;;  %v81_v6 = vld [vmem:[#allocation6 + $0x38] sm:$0xff]  ;;  %853 = vmatprep.mubr.msk.f32.mxu0 %vm1146_vm1, %v1147_v7  ;;  %s69_s3 = sld [smem:[#allocation2 + %s1138_s22]]  ;;  %v237_v9 = vld [vmem:[#allocation6 + $0xa0] sm:$0xff]  ;;  %v238_v10 = vld [vmem:[#allocation6 + $0xa8] sm:$0xff]  ;;  %vm83_vm2 = vcmask 261120   ;;  %s1148_s26 = smov 64  }
  0x3a   : > { %928 = vmatprep.subr.bf16.mxu1 %v1145_v4  ;;  %864 = vmatprep.mubr.msk.f32.mxu1 %vm1146_vm1, %v1147_v7  ;;  %v926_v8 = vpack.c.bf16 %v81_v6, %v80_v3  ;;  %v935_v12 = vpack.c.bf16 %v238_v10, %v237_v9  ;;  %v239_v13 = vld [vmem:[#allocation6 + $0xb0] sm:$0xff]  ;;  %v240_v14 = vld [vmem:[#allocation6 + $0xb8] sm:$0xff]  ;;  %v315_v16 = vld [vmem:[#allocation6] sm:$0xff]  ;;  %s1149_s27 = smov 32   ;;  %vm425_vm3 = vcmask 253952   ;;  %vm739_vm4 = vcmask 1040384  }
  0x3b   : > { %924 = vmatpush3.bf16.msra.mxu0 %v923_v5  ;;  %v938_v15 = vpack.c.bf16 %v240_v14, %v239_v13  ;;  %v316_v17 = vld [vmem:[#allocation6 + $0x8] sm:$0xff]  ;;  %v317_v20 = vld [vmem:[#allocation6 + $0x10] sm:$0xff]  ;;  %v318_v21 = vld [vmem:[#allocation6 + $0x18] sm:$0xff]  ;;  %s1150_s28 = smov 96   ;;  %s753_s29 = scalar_lea.vmem [#allocation9], %s1138_s22 }
  0x3c   : > { %925 = vmatprep.subr.bf16.mxu0 %v1145_v4  ;;  %v941_v19 = vpack.c.bf16 %v316_v17, %v315_v16  ;;  %v944_v22 = vpack.c.bf16 %v318_v21, %v317_v20  ;;  %v82_v25 = vld [vmem:[#allocation6 + $0xe0] sm:$0x1]  ;;  %v159_v42 = vld [vmem:[#allocation6 + $0x68] sm:$0xff]  ;;  %v160_v43 = vld [vmem:[#allocation6 + $0x70] sm:$0xff]  ;;  %s68_s22 = sadd.s32 1, %s1138_s22  }
  0x3d   : > { %v158_v41 = vld [vmem:[#allocation6 + $0x60] sm:$0xff]  ;;  %v161_v45 = vld [vmem:[#allocation6 + $0x78] sm:$0xff]  ;;  %v433_v48 = vld [vmem:[#allocation6 + $0x48] sm:$0xff]  ;;  %p65_p9 = scmp.ge.s32.totalorder %s68_s22, 8  }
  0x3e   : > { %v77_v11 = vld [vmem:[#allocation10] sm:$0x1]  ;;  %v236_v18 = vld [vmem:[#allocation10 + $0x2] sm:$0x1]  ;;  %v399_v30 = vld [vmem:[#allocation10 + $0x3] sm:$0x1]  ;;  %v929_v44 = vpack.c.bf16 %v159_v42, %v158_v41  ;;  %v932_v46 = vpack.c.bf16 %v161_v45, %v160_v43 }
  0x3f   : > { %927 = vmatpush3.bf16.msra.mxu0 %v926_v8  ;;  %p70_p7 = scmp.gt.s32.totalorder %s69_s3, 0  ;;  %p793_p8 = scmp.lt.s32.totalorder %s69_s3, 127  ;;  %v432_v47 = vld [vmem:[#allocation6 + $0x40] sm:$0xff]  ;;  %v157_v49 = vld [vmem:[#allocation10 + $0x1] sm:$0x1]  ;;  %v434_v51 = vld [vmem:[#allocation6 + $0x50] sm:$0xff] }
  0x40   : > { %934 = vmatprep.subr.bf16.mxu0 %v1145_v4  ;;  %930 = vmatpush3.bf16.msra.mxu1 %v929_v44  ;;  %v947_v50 = vpack.c.bf16 %v433_v48, %v432_v47  ;;  %v435_v52 = vld [vmem:[#allocation6 + $0x58] sm:$0xff]  ;;  %v162_v59 = vld [vmem:[#allocation6 + $0xe1] sm:$0x1]  ;;  %v549_v13 = vld [vmem:[#allocation6 + $0x90] sm:$0xff]  ;;  %s1151_s0 = smov (%p65_p9), [#allocation9]   ;;  %s1152_s6 = smov (%p65_p9), [#allocation10]  }
  0x41   : > { %s1320_s3 = smov (!%p70_p7, %s69_s3), 0  ;;  %931 = vmatprep.subr.bf16.mxu1 %v1145_v4  ;;  %v950_v54 = vpack.c.bf16 %v435_v52, %v434_v51  ;;  %v515_v57 = vld [vmem:[#allocation10 + $0x4] sm:$0x1]  ;;  %v630_v20 = vld [vmem:[#allocation10 + $0x5] sm:$0x1]  ;;  %s761_s30 = sshll.u32 (%p65_p9), %s1151_s0, 4  ;;  %s762_s30 = int_to_ptr.vmem [resolvable:$true] %s761_s30 }
  0x42   : > { %854 = vmatmul.mubr.msk.f32.vlgmr.msra.gmra.mrb[0].mxu0 %vm83_vm2, %v77_v11  ;;  %s1322_s3 = smov (!%p793_p8, %s1320_s3), 127  ;;  %v547_v11 = vld [vmem:[#allocation6 + $0x80] sm:$0xff]  ;;  %v665_v42 = vld [vmem:[#allocation6 + $0xd8] sm:$0xff]  ;;  %s771_s7 = sshll.u32 (%p65_p9), %s1152_s6, 4  ;;  %s772_s7 = int_to_ptr.vmem [resolvable:$true] %s771_s7 }
  0x43   : > { %936 = vmatpush3.bf16.msra.mxu0 %v935_v12  ;;  %875 = vmatprep.mubr.msk.f32.mxu0 %vm1146_vm1, %v1147_v7  ;;  %s74_s25 = scalar_lea.vmem %s1314_s1, %s1322_s3  ;;  %v548_v12 = vld [vmem:[#allocation6 + $0x88] sm:$0xff]  ;;  %v666_v48 = vld [vmem:[#allocation6 + $0xe3] sm:$0x1]  ;;  %s1078_s8 = scalar_lea.vmem (%p65_p9), %s762_s30, 128 }
  0x44   : > { %937 = vmatprep.subr.bf16.mxu0 %v1145_v4  ;;  %v75_v23 = vld [vmem:[%s74_s25] sm:$0x1]  ;;  %933 = vmatpush3.bf16.msra.mxu1 %v932_v46  ;;  %v953_v14 = vpack.c.bf16 %v548_v12, %v547_v11  ;;  %p1079_p10 = scmp.ne.s32.totalorder (%p65_p9), %s762_s30, %s1078_s8  ;;  %p1083_p11 = scmp.lt.s32.totalorder (%p65_p9), %s762_s30, %s762_s30 }
  0x45   : > { %v76_v24 = vmax.f32 %v75_v23, 0.0  ;;  %946 = vmatprep.subr.bf16.mxu1 %v1145_v4  ;;  %p1084_p12 = scmp.lt.s32.totalorder (%p65_p9), %s1078_s8, %s1078_s8 }
  0x47   : > { %939 = vmatpush3.bf16.msra.mxu0 %v938_v15  ;;  %865 = vmatmul.mubr.msk.f32.vlgmr.msra.gmra.mrb[0].mxu1 %vm83_vm2, %v157_v49  ;;  %v550_v15 = vld [vmem:[#allocation6 + $0x98] sm:$0xff]  ;;  %p1085_p13 = por (%p65_p9), %p1084_p12, %p1083_p11 }
  0x48   : > { %940 = vmatprep.subr.bf16.mxu0 %v1145_v4  ;;  %948 = vmatpush3.bf16.msra.mxu1 %v947_v50  ;;  %v956_v16 = vpack.c.bf16 %v550_v15, %v549_v13 }
  0x49   : > { %949 = vmatprep.subr.bf16.mxu1 %v1145_v4  ;;  %897 = vmatprep.mubr.msk.f32.mxu1 %vm1146_vm1, %v1147_v7  ;;  %p1086_p0 = pnand (%p65_p9), %p1085_p13, %p1079_p10 }
  0x4a   : > { %876 = vmatmul.mubr.msk.f32.vlgmr.msra.gmra.mrb[2].mxu0 %vm83_vm2, %v236_v18 }
  0x4b   : > { %942 = vmatpush3.bf16.msra.mxu0 %v941_v19  ;;  %886 = vmatprep.mubr.msk.f32.mxu0 %vm1146_vm1, %v1147_v7 }
  0x4c   : > { %943 = vmatprep.subr.bf16.mxu0 %v1145_v4  ;;  %951 = vmatpush3.bf16.msra.mxu1 %v950_v54 }
  0x4d   : > { %958 = vmatprep.subr.bf16.mxu1 %v1145_v4 }
  0x4f   : > { %945 = vmatpush3.bf16.msra.mxu0 %v944_v22  ;;  %v241_v22 = vld [vmem:[#allocation6 + $0xe2] sm:$0x1] }
  0x50   : > { %952 = vmatprep.subr.bf16.mxu0 %v1145_v4 }
  0x52   : > { %887 = vmatmul.mubr.msk.f32.vlgmr.msra.gmra.mrb[0].mxu0 %vm83_vm2, %v76_v24 }
  0x53   : > { %908 = vmatprep.mubr.msk.f32.mxu0 %vm1146_vm1, %v1147_v7  ;;  %954 = vmatpush3.bf16.msra.mxu0 %v953_v14 }
  0x54   : > { %955 = vmatprep.subr.bf16.mxu0 %v1145_v4 }
  0x57   : > { %957 = vmatpush3.bf16.msra.mxu0 %v956_v16 }
 0x125   : > { %v388_v26 = vpop.f32.mrb[0].mxu0 }
 0x126   : > { %v964_v27 = vadd.f32 %v388_v26, %v82_v25  ;;  %v888_v28 = vpop.f32.mrb[1].mxu0 }
 0x128   : > { %994 = vtanh.f32 %v964_v27  ;;  %v802_v31 = vmul.f32 -1.442695, %v964_v27 }
 0x12a   : > { %996 = vpow2.f32 %v802_v31 }
 0x132   : > { %v995_v29 = vpop.eup %994 }
 0x133   : > { %406 = vrot.lane.b32.xlu0 %v995_v29, %s1148_s26 }
 0x134   : > { %v997_v32 = vpop.eup %996 }
 0x135   : > { %v395_v33 = vadd.f32 1.0, %v997_v32 }
 0x137   : > { %401 = vrot.lane.b32.xlu0 %v399_v30, %s1149_s27  ;;  %998 = vrcp.f32 %v395_v33 }
 0x141   : > { %v999_v34 = vpop.eup %998 }
 0x1a5   : > { %v407_v35 = vpop.permute.xlu0 %406 }
 0x1a6   : > { %v409_v36 = vmul.f32 %v999_v34, %v407_v35 }
 0x1a8   : > { %411 = vrot.lane.b32.xlu1 %v409_v36, %s1149_s27 }
 0x1a9   : > { %v402_v37 = vpop.permute.xlu0 %401 }
 0x1aa   : > { %v404_v38 = vmul.f32 %v999_v34, %v402_v37  ;;  %v662_v37 = vld [vmem:[#allocation6 + $0xc0] sm:$0xff] }
 0x21a   : > { %v412_v39 = vpop.permute.xlu1 %411 }
 0x21b   : > { %v1243_v40 = vadd.f32 %v412_v39, %v404_v38  ;;  %v663_v38 = vld [vmem:[#allocation6 + $0xc8] sm:$0xff]  ;;  %v664_v39 = vld [vmem:[#allocation6 + $0xd0] sm:$0xff] }
 0x21c   : > { %v959_v41 = vpack.c.bf16 %v663_v38, %v662_v37  ;;  %v962_v43 = vpack.c.bf16 %v665_v42, %v664_v39 }
 0x21d   : > { %1000 = vtanh.f32 %v1243_v40 }
 0x227   : > { %v1001_v53 = vpop.eup %1000 }
 0x228   : > { %417 = vrot.lane.b32.xlu1 %v1001_v53, %s1148_s26 }
 0x29a   : > { %v418_v55 = vpop.permute.xlu1 %417 }
 0x29b   : > { %v420_v56 = vmul.f32 %v999_v34, %v418_v55 }
 0x29d   : > { %422 = vrot.lane.b32.xlu0 %v420_v56, %s1149_s27 }
 0x2a1   : > { %517 = vrot.lane.b32.xlu0 %v515_v57, %s1149_s27 }
 0x30f   : > { %v423_v58 = vpop.permute.xlu0 %422 }
 0x310   : > { %426 = vst.msk [vmem:[#allocation10] sm:$0x1] %vm425_vm3, %v423_v58  ;;  %898 = vmatmul.mubr.msk.f32.vlgmr.msra.gmra.mrb[0].mxu1 %vm83_vm2, %v423_v58 }
 0x311   : > { %919 = vmatprep.mubr.msk.f32.mxu1 %vm1146_vm1, %v1147_v7  ;;  %960 = vmatpush3.bf16.msra.mxu1 %v959_v41 }
 0x312   : > { %961 = vmatprep.subr.bf16.mxu1 %v1145_v4 }
 0x313   : > { %v518_v8 = vpop.permute.xlu0 %517 }
 0x315   : > { %963 = vmatpush3.bf16.msra.mxu1 %v962_v43 }
 0x3e3   : > { %v504_v60 = vpop.f32.mrb[0].mxu1 }
 0x3e4   : > { %v965_v61 = vadd.f32 %v504_v60, %v162_v59  ;;  %v899_v62 = vpop.f32.mrb[1].mxu1 }
 0x3e6   : > { %1002 = vtanh.f32 %v965_v61  ;;  %v804_v0 = vmul.f32 -1.442695, %v965_v61 }
 0x3e8   : > { %1004 = vpow2.f32 %v804_v0 }
 0x3f0   : > { %v1003_v63 = vpop.eup %1002 }
 0x3f1   : > { %522 = vrot.lane.b32.xlu1 %v1003_v63, %s1148_s26 }
 0x3f2   : > { %v1005_v1 = vpop.eup %1004 }
 0x3f3   : > { %v511_v2 = vadd.f32 1.0, %v1005_v1 }
 0x3f5   : > { %1006 = vrcp.f32 %v511_v2 }
 0x3ff   : > { %v1007_v3 = vpop.eup %1006 }
 0x400   : > { %v520_v7 = vmul.f32 %v1007_v3, %v518_v8 }
 0x463   : > { %v523_v5 = vpop.permute.xlu1 %522 }
 0x464   : > { %v525_v6 = vmul.f32 %v1007_v3, %v523_v5 }
 0x466   : > { %527 = vrot.lane.b32.xlu1 %v525_v6, %s1149_s27 }
 0x4d8   : > { %v528_v9 = vpop.permute.xlu1 %527 }
 0x4d9   : > { %v1262_v10 = vadd.f32 %v528_v9, %v520_v7 }
 0x4db   : > { %1008 = vtanh.f32 %v1262_v10 }
 0x4e5   : > { %v1009_v17 = vpop.eup %1008 }
 0x4e6   : > { %533 = vrot.lane.b32.xlu0 %v1009_v17, %s1148_s26 }
 0x558   : > { %v534_v18 = vpop.permute.xlu0 %533 }
 0x559   : > { %v536_v19 = vmul.f32 %v1007_v3, %v534_v18 }
 0x55b   : > { %538 = vrot.lane.b32.xlu1 %v536_v19, %s1149_s27 }
 0x55f   : > { %632 = vrot.lane.b32.xlu1 %v630_v20, %s1149_s27 }
 0x5cd   : > { %v539_v21 = vpop.permute.xlu1 %538 }
 0x5ce   : > { %541 = vst.msk [vmem:[#allocation10 + $0x1] sm:$0x1] %vm425_vm3, %v539_v21  ;;  %909 = vmatmul.mubr.msk.f32.vlgmr.msra.gmra.mrb[2].mxu0 %vm83_vm2, %v539_v21 }
 0x5d1   : > { %v633_v33 = vpop.permute.xlu1 %632 }
 0x6a1   : > { %v619_v23 = vpop.f32.mrb[2].mxu0 }
 0x6a2   : > { %v966_v24 = vadd.f32 %v619_v23, %v241_v22  ;;  %v910_v25 = vpop.f32.mrb[3].mxu0 }
 0x6a4   : > { %1010 = vtanh.f32 %v966_v24  ;;  %v806_v27 = vmul.f32 -1.442695, %v966_v24 }
 0x6a6   : > { %1012 = vpow2.f32 %v806_v27 }
 0x6ae   : > { %v1011_v26 = vpop.eup %1010 }
 0x6af   : > { %637 = vrot.lane.b32.xlu0 %v1011_v26, %s1148_s26 }
 0x6b0   : > { %v1013_v28 = vpop.eup %1012 }
 0x6b1   : > { %v626_v29 = vadd.f32 1.0, %v1013_v28 }
 0x6b3   : > { %1014 = vrcp.f32 %v626_v29 }
 0x6bd   : > { %v1015_v30 = vpop.eup %1014 }
 0x6be   : > { %v635_v34 = vmul.f32 %v1015_v30, %v633_v33 }
 0x721   : > { %v638_v31 = vpop.permute.xlu0 %637 }
 0x722   : > { %v640_v32 = vmul.f32 %v1015_v30, %v638_v31 }
 0x724   : > { %642 = vrot.lane.b32.xlu0 %v640_v32, %s1149_s27 }
 0x796   : > { %v643_v35 = vpop.permute.xlu0 %642 }
 0x797   : > { %v645_v36 = vadd.f32 %v643_v35, %v635_v34 }
 0x799   : > { %1016 = vtanh.f32 %v645_v36 }
 0x7a3   : > { %v1017_v44 = vpop.eup %1016 }
 0x7a4   : > { %648 = vrot.lane.b32.xlu1 %v1017_v44, %s1148_s26 }
 0x816   : > { %v649_v45 = vpop.permute.xlu1 %648 }
 0x817   : > { %v651_v46 = vmul.f32 %v1015_v30, %v649_v45 }
 0x819   : > { %653 = vrot.lane.b32.xlu0 %v651_v46, %s1149_s27 }
 0x88b   : > { %v654_v47 = vpop.permute.xlu0 %653 }
 0x88c   : > { %656 = vst.msk [vmem:[#allocation10 + $0x2] sm:$0x1] %vm425_vm3, %v654_v47  ;;  %920 = vmatmul.mubr.msk.f32.vlgmr.msra.gmra.mrb[2].mxu1 %vm83_vm2, %v654_v47 }
 0x95f   : > { %v735_v49 = vpop.f32.mrb[2].mxu1 }
 0x960   : > { %v736_v50 = vadd.f32 %v735_v49, %v666_v48  ;;  %v921_v51 = vpop.f32.mrb[3].mxu1 }
 0x962   : > { %v740_v4 = vsel %vm739_vm4, %v736_v50, -inf }
 0x963   : > { %741 = vmax.xlane.f32.xlu1 %v740_v4 }
 0x974   : > { %543 = vrot.lane.b32.xlu1 %v1262_v10, %s1150_s28 }
 0x978   : > { %658 = vrot.lane.b32.xlu1 %v645_v36, %s1150_s28 }
 0x9f0   : > { %v742_v52 = vpop.xlane.xlu1 %741 }
 0x9f1   : > { %v743_v53 = vsub.f32 %v736_v50, %v742_v52 }
 0x9f3   : > { %v744_v54 = vmul.f32 1.442695, %v743_v53 }
 0x9f4   : > { %v544_v55 = vpop.permute.xlu1 %543 }
 0x9f5   : > { %1018 = vpow2.f32 %v744_v54  ;;  %546 = vst.msk [vmem:[#allocation10 + $0x4] sm:$0x1] %vm425_vm3, %v544_v55 }
 0x9f8   : > { %v659_v56 = vpop.permute.xlu1 %658 }
 0x9f9   : > { %661 = vst.msk [vmem:[#allocation10 + $0x5] sm:$0x1] %vm425_vm3, %v659_v56 }
 0x9ff   : > { %v1019_v57 = vpop.eup %1018 }
 0xa00   : > { %v746_v58 = vsel %vm739_vm4, %v1019_v57, 0.0 }
 0xa01   : > { %747 = vadd.xlane.f32.xlu0 %v746_v58 }
 0xa17   : > { %428 = vrot.lane.b32.xlu0 %v1243_v40, %s1150_s28 }
 0xa8e   : > { %v748_v59 = vpop.xlane.xlu0 %747 }
 0xa8f   : > { %1020 = vlog2.f32 %v748_v59 }
 0xa92   : > { %v429_v60 = vpop.permute.xlu0 %428 }
 0xa93   : > { %431 = vst.msk [vmem:[#allocation10 + $0x3] sm:$0x1] %vm425_vm3, %v429_v60 }
 0xa99   : > { %v1021_v61 = vpop.eup %1020 }
 0xa9a   : > { %v750_v62 = vmul.f32 0.6931472, %v1021_v61  ;;  %67 = sbr.rel (!%p65_p9) target bundleno = 56 (0x38), region = 65 }
 0xa9c   : > { %v751_v63 = vadd.f32 %v750_v62, %v742_v52 }
 0xa9e   : > { %v752_v0 = vsub.f32 %v736_v50, %v751_v63 }
 0xaa0   : > { %754 = vst [vmem:[%s753_s29] sm:$0x1] %v752_v0 }
 0xaa1   :  { %1089 = shalt.err (!%p1086_p0)
}
 0xaa2   :  { %s1090_s11 = scalar_lea.hbm %s1317_s4, 128 }
 0xaa3   :  { %p1091_p1 = scmp.ne.s32.totalorder %s1317_s4, %s1090_s11  ;;  %p1094_p2 = scmp.lt.u32.totalorder %s1090_s11, %s1317_s4 }
 0xaa5   :  { %p1096_p3 = pnand %p1094_p2, %p1091_p1 }
 0xaa7   :  { %1099 = shalt.err (!%p1096_p3)
}
 0xaa8   :  { %764 = dma.vmem_to_hbm [thread:$0]  %s762_s30, 128, %s1317_s4, [#allocation4]  }
 0xaa9   :  { %s1100_s17 = scalar_lea.vmem %s772_s7, 128  ;;  %p1105_p5 = scmp.lt.s32.totalorder %s772_s7, %s772_s7 }
 0xaaa   :  { %p1101_p4 = scmp.ne.s32.totalorder %s772_s7, %s1100_s17  ;;  %p1106_p6 = scmp.lt.s32.totalorder %s1100_s17, %s1100_s17 }
 0xaac   :  { %p1107_p7 = por %p1106_p6, %p1105_p5 }
 0xaae   :  { %p1108_p8 = pnand %p1107_p7, %p1101_p4 }
 0xab0   :  { %1111 = shalt.err (!%p1108_p8)
}
 0xab1   :  { %s1112_s20 = scalar_lea.hbm %s1318_s5, 128 }
 0xab2   :  { %p1113_p9 = scmp.ne.s32.totalorder %s1318_s5, %s1112_s20  ;;  %p1116_p10 = scmp.lt.u32.totalorder %s1112_s20, %s1318_s5 }
 0xab4   :  { %p1118_p11 = pnand %p1116_p10, %p1113_p9 }
 0xab6   :  { %1121 = shalt.err (!%p1118_p11)
}
 0xab7   :  { %774 = dma.vmem_to_hbm [thread:$0]  %s772_s7, 128, %s1318_s5, [#allocation11]  }
 0xab8   :  { %1132 = dma.done.wait [#allocation4], 128  }
 0xab9   :  { %1133 = vsyncadd [#allocation4], 4294967168 }
 0xaba   :  { %1134 = dma.done.wait [#allocation11], 128  }
 0xabb   :  { %1135 = vsyncadd [#allocation11], 4294967168 }
 0xabc   :  { %781 = vsyncpa [#allocation3], 1 }
 0xabd   :  { %782 = vsyncpa [#allocation8], 1 }
 0xabe   :  { %783 = vsyncpa [#allocation4], 1 }
 0xabf   :  { %784 = vsyncpa [#allocation11], 1 }
 0xac0   :  { %785 = vsyncpa [#allocation5], 1 }

</bundles_post_ra>
